<compile_context>
chip_gen: v7x
topology: tpu7x:2x2x1
jax: 0.10.0
libtpu: 0.0.40
codegen_flags: <defaults>
</compile_context>

<pallas_src>
import math
import numpy as np
import jax
import jax.numpy as jnp
from jax import lax
from jax.experimental import pallas as pl
from jax.experimental.pallas import tpu as pltpu

_TILE_OUT_TARGET_BYTES = 6 << 20   # ~6 MiB output tiles (amortize ~0.35us/step)


def _round_up(v, m):
    return (v + m - 1) // m * m


def _pe_kernel(x_ref, e_ref, o_ref):
    # x_ref: (tm, Fw+1)  packed features + constant-1 phase column (native dtype)
    # e_ref: (Fw+1, W)   expansion matrix: div_term folded in + pi/2 phase row
    # o_ref: (tm, W)     lane-dense output slab
    #
    #   ang[m, j] = x[m, j // d_per] * div_term[(j % d_per) // 2] + (j odd)*pi/2
    #   out[m, j] = sin(ang[m, j])                (cos(t) == sin(t + pi/2))
    ang = jnp.dot(
        x_ref[...].astype(jnp.float32),          # in-kernel cast; rides in slack
        e_ref[...],
        precision=lax.Precision.HIGHEST,         # f32-faithful MXU passes
        preferred_element_type=jnp.float32,
    )
    # TODO(synk): jnp.sin lowers to a VPU range-reduction + polynomial; if the
    # bundle shows this VALU-bound, exploit the bounded |ang| for a single
    # Cody-Waite step + shorter minimax polynomial (bf16 on v6e/v7x).
    o_ref[...] = jnp.sin(ang).astype(o_ref.dtype)


def _pick_row_tile(m_rows, padded_row_bytes):
    """Row tile: fixed multiple of 8 targeting ~6 MiB VMEM output blocks."""
    t = max(8, _TILE_OUT_TARGET_BYTES // max(padded_row_bytes, 1))
    t = (t // 8) * 8
    if m_rows <= t:
        return m_rows          # single block == full dim (always legal)
    return t                   # multiple of 8; cdiv grid masks the ragged tail


def positional_encoding(x, d_model, out_dtype=jnp.float32):
    """Pallas-TPU equivalent of _PositionalEncoding.forward (dropout p=0.0).

    Pass out_dtype=jnp.bfloat16 if downstream consumers accept it: the kernel
    is writeback-heavy, so bf16 halves its HBM traffic.  Default f32 matches
    the torch module bit-for-bit in dtype.
    """
    B, S, F = x.shape
    # same (operator-precedence quirky) assert as the torch module:
    assert (d_model % F) * 2 == 0
    d_per = d_model // F
    assert d_per % 2 == 0, "d_per_feature must be even (sin/cos interleave)"

    interval_size = 10
    half_idx = np.arange(0, d_per, 2, dtype=np.float32)
    div_term = (1.0 / interval_size) * 2.0 * math.pi * np.exp(
        half_idx * math.log(math.sqrt(2.0)))
    div_full = np.repeat(div_term, 2).astype(np.float32)   # [d0,d0,d1,d1,...]

    N = B * S
    # Lane packing: pack g consecutive rows per kernel row so the output
    # block's last dim is a multiple of 128 lanes (unmasked, contiguous vst).
    g = math.lcm(d_model, 128) // d_model
    if N % g != 0:
        g = 1   # still correct; masked partial stores only if d_model % 128 != 0
    M = N // g            # kernel rows
    Fw = g * F            # packed features per kernel row
    W = g * d_model       # output lanes per kernel row

    # Expansion matrix with phase row:
    #   E[q, q*d_per + k] = div_term[k // 2]     (q = packed feature index)
    #   E[Fw, j]          = (j odd) * pi/2       (driven by constant-1 column)
    E = np.zeros((Fw + 1, W), dtype=np.float32)
    for q in range(Fw):
        E[q, q * d_per:(q + 1) * d_per] = div_full
    E[Fw, 1::2] = 0.5 * math.pi

    # Keep x in its native dtype (no wrapper-side HBM cast); append the
    # constant-1 column that drives the phase row of E.
    xk = jnp.concatenate(
        [x.reshape(M, Fw), jnp.ones((M, 1), dtype=x.dtype)], axis=1)

    out_itemsize = jnp.dtype(out_dtype).itemsize
    tm = _pick_row_tile(M, _round_up(W, 128) * out_itemsize)
    grid = (pl.cdiv(M, tm),)   # >= 2 steps whenever output exceeds one tile

    # Double-buffered in + out + E blocks (lane/sublane padded) + margin.
    in_blk = _round_up(tm, 8) * _round_up(Fw + 1, 128) * 4
    out_blk = _round_up(tm, 8) * _round_up(W, 128) * out_itemsize
    e_blk = _round_up(Fw + 1, 8) * _round_up(W, 128) * 4
    vmem_need = 2 * (in_blk + out_blk + e_blk) + (2 << 20)
    vmem_limit = int(min(max(vmem_need, 32 << 20), 48 << 20))  # v7x-safe cap

    out = pl.pallas_call(
        _pe_kernel,
        out_shape=jax.ShapeDtypeStruct((M, W), out_dtype),
        grid=grid,
        in_specs=[
            pl.BlockSpec((tm, Fw + 1), lambda i: (i, 0)),
            pl.BlockSpec((Fw + 1, W), lambda i: (0, 0)),   # tiny constant matrix
        ],
        out_specs=pl.BlockSpec((tm, W), lambda i: (i, 0)),
        compiler_params=pltpu.CompilerParams(
            dimension_semantics=("parallel",),
            vmem_limit_bytes=vmem_limit),
    )(xk, jnp.asarray(E))

    # nn.Dropout(p=0.0) is identity; (M, W) is a row-major view of (N, d_model),
    # so this reshape matches torch's .view(B, S, d_model).
    return out.reshape(B, S, d_model)


def _reference(x, d_model):
    x = np.asarray(x, dtype=np.float32)
    B, S, F = x.shape
    d_per = d_model // F
    interval_size = 10
    div_term = (1.0 / interval_size) * 2.0 * math.pi * np.exp(
        np.arange(0, d_per, 2, dtype=np.float32) * math.log(math.sqrt(2.0)))
    pe = np.zeros((B, S, F, d_per), dtype=np.float32)
    pe[..., 0::2] = np.sin(x[..., None] * div_term)
    pe[..., 1::2] = np.cos(x[..., None] * div_term)
    return pe.reshape(B, S, d_model)


if __name__ == "__main__":
    key = jax.random.PRNGKey(0)

    # `device_test_tensor` in the torch module is an nn.Parameter(1.0) used
    # only for device placement; it carries no compute, so it is omitted here.

    # Main case: d_model divides into 128-wide packed rows (g = 4).
    B, S, F = 2, 8, 4
    d_model = 32  # d_per_feature = 8
    x = jax.random.normal(key, (B, S, F), dtype=jnp.float32)
    out = jax.block_until_ready(positional_encoding(x, d_model))
    assert out.shape == (B, S, d_model)
    np.testing.assert_allclose(np.asarray(out), _reference(np.asarray(x), d_model),
                               rtol=1e-5, atol=1e-5)

    # Second case: d_model = 24 exercises the generalized lcm packing (g = 16,
    # W = 384) instead of the old 128 % d_model == 0 special case.
    d_model2 = 24  # d_per_feature = 6
    x2 = jax.random.normal(jax.random.PRNGKey(0), (B, S, F), dtype=jnp.float32)
    out2 = jax.block_until_ready(positional_encoding(x2, d_model2))
    assert out2.shape == (B, S, d_model2)
    np.testing.assert_allclose(np.asarray(out2), _reference(np.asarray(x2), d_model2),
                               rtol=1e-5, atol=1e-5)

    print("KERNEL_OK")
</pallas_src>

<mosaic_0001>
module attributes {stable_mosaic.version = 11 : i64} {
  func.func @_pe_kernel(%arg0: i32, %arg1: memref<4x17xf32, #tpu.memory_space<vmem>>, %arg2: memref<17x128xf32, #tpu.memory_space<vmem>>, %arg3: memref<4x128xf32, #tpu.memory_space<vmem>>) attributes {dimension_semantics = [#tpu.dimension_semantics<parallel>], iteration_bounds = array<i64: 1>, scalar_prefetch = 0 : i64, scratch_operands = 0 : i64, tpu.core_type = #tpu.core_type<tc>, window_params = [{transform_indices = @transform_0, window_bounds = array<i64: 4, 17>}, {pipeline_mode = #tpu.pipeline_mode<synchronous>, transform_indices = @transform_1, window_bounds = array<i64: 17, 128>}, {transform_indices = @transform_2, window_bounds = array<i64: 4, 128>}]} {
    %c0 = arith.constant 0 : index
    %c0_0 = arith.constant 0 : index
    %0 = vector.load %arg1[%c0, %c0_0] : memref<4x17xf32, #tpu.memory_space<vmem>>, vector<4x17xf32>
    %c0_1 = arith.constant 0 : index
    %c0_2 = arith.constant 0 : index
    %1 = vector.load %arg2[%c0_1, %c0_2] : memref<17x128xf32, #tpu.memory_space<vmem>>, vector<17x128xf32>
    %cst = arith.constant dense<0.000000e+00> : vector<4x128xf32>
    %2 = tpu.matmul %0, %1, %cst {dimension_numbers = #tpu.dot_dimension_numbers<[1], [0], [0], [1], [0, 0, 1, 1], [], []>, precision = #tpu.contract_precision<fp32>} : vector<4x17xf32>, vector<17x128xf32>, vector<4x128xf32> -> vector<4x128xf32>
    %3 = math.sin %2 : vector<4x128xf32>
    %c0_3 = arith.constant 0 : index
    %c0_4 = arith.constant 0 : index
    %4 = vector.load %arg3[%c0_3, %c0_4] : memref<4x128xf32, #tpu.memory_space<vmem>>, vector<4x128xf32>
    tpu.vector_store %arg3[%c0_3, %c0_4], %3 {strides = array<i32>} : memref<4x128xf32, #tpu.memory_space<vmem>>, vector<4x128xf32>,
    return
  }
  func.func @transform_0(%arg0: i32) -> (i32, i32) {
    %c0_i32 = arith.constant 0 : i32
    %c0_i32_0 = arith.constant 0 : i32
    return %arg0, %c0_i32 : i32, i32
  }
  func.func @transform_1(%arg0: i32) -> (i32, i32) {
    %c0_i32 = arith.constant 0 : i32
    %c0_i32_0 = arith.constant 0 : i32
    %c0_i32_1 = arith.constant 0 : i32
    return %c0_i32, %c0_i32_0 : i32, i32
  }
  func.func @transform_2(%arg0: i32) -> (i32, i32) {
    %c0_i32 = arith.constant 0 : i32
    %c0_i32_0 = arith.constant 0 : i32
    return %arg0, %c0_i32 : i32, i32
  }
}

</mosaic_0001>

<bundles_post_ra>
// kernel: tpu_custom_call.1
= control target key start
LH: loop header
LB: loop body
LE: loop exit
PB: predicated region body
PF: predicated region fallthrough
CT: control target
= control target key end

     0   :  { %7 = vsyncpa [#allocation3], 0  ;;  %s945_s0 = inlined_call_operand.hbm [shape: f32[4,17], index: 0, kind: input, shape index: {}]   ;;  %s946_s1 = inlined_call_operand.hbm [shape: f32[17,128], index: 1, kind: input, shape index: {}]   ;;  %s947_s2 = inlined_call_operand.hbm [shape: f32[4,128], index: 2, kind: output, shape index: {}]  }
   0x1   :  { %8 = vsyncpa [#allocation6], 0 }
   0x2   :  { %9 = vsyncpa [#allocation4], 0  ;;  %s846_s9 = smov [#allocation2]   ;;  %s847_s11 = smov [#allocation5]  }
   0x3   :  { %s16_s10 = sshll.u32 %s846_s9, 4  ;;  %s25_s12 = sshll.u32 %s847_s11, 4  ;;  %s17_s10 = int_to_ptr.vmem [resolvable:$true] %s16_s10  ;;  %s875_s12 = int_to_ptr.vmem [resolvable:$true] %s25_s12 }
   0x4   :  { %s774_s15 = scalar_lea.hbm %s945_s0, 64 }
   0x5   :  { %p775_p0 = scmp.ne.s32.totalorder %s945_s0, %s774_s15  ;;  %p778_p1 = scmp.lt.u32.totalorder %s774_s15, %s945_s0 }
   0x7   :  { %p780_p2 = pnand %p778_p1, %p775_p0 }
   0x9   :  { %783 = shalt.err (!%p780_p2)
}
   0xa   :  { %s784_s20 = scalar_lea.vmem %s17_s10, 64  ;;  %p789_p4 = scmp.lt.s32.totalorder %s17_s10, %s17_s10 }
   0xb   :  { %p785_p3 = scmp.ne.s32.totalorder %s17_s10, %s784_s20  ;;  %p790_p5 = scmp.lt.s32.totalorder %s784_s20, %s784_s20 }
   0xd   :  { %p791_p6 = por %p790_p5, %p789_p4 }
   0xf   :  { %p792_p7 = pnand %p791_p6, %p785_p3 }
  0x11   :  { %795 = shalt.err (!%p792_p7)
}
  0x12   :  { %19 = dma.hbm_to_vmem [thread:$0]  %s945_s0, 64, %s17_s10, [#allocation3]  }
  0x13   :  { %s796_s25 = scalar_lea.hbm %s946_s1, 384 }
  0x14   :  { %p797_p8 = scmp.ne.s32.totalorder %s946_s1, %s796_s25  ;;  %p800_p9 = scmp.lt.u32.totalorder %s796_s25, %s946_s1 }
  0x16   :  { %p802_p10 = pnand %p800_p9, %p797_p8 }
  0x18   :  { %805 = shalt.err (!%p802_p10)
}
  0x19   :  { %s806_s30 = scalar_lea.vmem %s875_s12, 384  ;;  %p811_p12 = scmp.lt.s32.totalorder %s875_s12, %s875_s12 }
  0x1a   :  { %p807_p11 = scmp.ne.s32.totalorder %s875_s12, %s806_s30  ;;  %p812_p13 = scmp.lt.s32.totalorder %s806_s30, %s806_s30 }
  0x1c   :  { %p813_p0 = por %p812_p13, %p811_p12 }
  0x1e   :  { %p814_p1 = pnand %p813_p0, %p807_p11 }
  0x20   :  { %817 = shalt.err (!%p814_p1)
}
  0x21   :  { %s848_s0 = smov 128   ;;  %s849_s3 = smov 8  }
  0x22   :  { %31 = dma.hbm_to_vmem [thread:$0]  %s946_s1, 384, %s875_s12, [#allocation6], %s848_s0, %s848_s0, %s849_s3  }
  0x23   :  { %840 = dma.done.wait [#allocation3], 64  }
  0x24   :  { %841 = vsyncadd [#allocation3], 4294967232 }
  0x25   :  { %842 = dma.done.wait [#allocation6], 384  }
  0x26   :  { %843 = vsyncadd [#allocation6], 4294966912  ;;  %v850_v0 = vmov 0.0|0.0   ;;  %vm851_vm0 = vmmov 0   ;;  %v852_v1 = vmov 0.0   ;;  %vm46_vm1 = vcmask 1040384  }
  0x27   :  { %734 = vmatprep.subr.bf16.mxu0 %v850_v0  ;;  %725 = vmatprep.subr.bf16.mxu1 %v850_v0  ;;  %vm42_vm2 = vcmask 138240   ;;  %v39_v2 = vld [vmem:[#allocation5] sm:$0xff]  ;;  %v40_v3 = vld [vmem:[#allocation5 + $0x8] sm:$0xff]  ;;  %v41_v4 = vld [vmem:[#allocation5 + $0x10] sm:$0x1]  ;;  %s859_s1 = smov [#allocation7]  }
  0x28   :  { %704 = vmatprep.mubr.msk.f32.mxu0 %vm851_vm0, %v852_v1  ;;  %677 = vmatprep.mubr.msk.f32.mxu1 %vm851_vm0, %v852_v1  ;;  %v51_v5 = vand.u32 4294901760, %v39_v2  ;;  %v54_v6 = vand.u32 4294901760, %v40_v3  ;;  %v48_v7 = vsel %vm46_vm1, %v41_v4, 0  ;;  %v38_v8 = vld [vmem:[#allocation2] sm:$0xf]  ;;  %s633_s6 = sshll.u32 %s859_s1, 4  ;;  %s634_s6 = int_to_ptr.vmem [resolvable:$true] %s633_s6 }
  0x29   :  { %v57_v9 = vand.u32 4294901760, %v48_v7  ;;  %v44_v10 = vsel %vm42_vm2, %v38_v8, 0  ;;  %v853_v47 = vmov 683565275   ;;  %v854_v49 = vmov 2475754826   ;;  %p823_p3 = scmp.lt.s32.totalorder %s634_s6, %s634_s6 }
  0x2a   :  { %v726_v11 = vpack.c.bf16 %v54_v6, %v51_v5  ;;  %v130_v12 = vsub.f32 %v39_v2, %v51_v5  ;;  %v137_v13 = vsub.f32 %v40_v3, %v54_v6  ;;  %v118_v14 = vand.u32 4294901760, %v44_v10  ;;  %s818_s7 = scalar_lea.vmem %s634_s6, 64 }
  0x2b   :  { %v144_v15 = vsub.f32 %v48_v7, %v57_v9  ;;  %v855_v52 = vmov 2131351028   ;;  %v856_v55 = vmov 2102212464   ;;  %v857_v58 = vmov 920167782   ;;  %p819_p2 = scmp.ne.s32.totalorder %s634_s6, %s818_s7  ;;  %p824_p4 = scmp.lt.s32.totalorder %s818_s7, %s818_s7 }
  0x2c   :  { %736 = vmatpush3.bf16.msra.mxu0 %v726_v11  ;;  %727 = vmatpush3.bf16.msra.mxu1 %v726_v11  ;;  %v119_v16 = vsub.f32 %v44_v10, %v118_v14  ;;  %v131_v17 = vand.u32 4294901760, %v130_v12  ;;  %v138_v18 = vand.u32 4294901760, %v137_v13  ;;  %v732_v31 = vpack.c.bf16 %v137_v13, %v130_v12 }
  0x2d   :  { %702 = vmatprep.subr.mxu0 %v852_v1  ;;  %675 = vmatprep.subr.mxu1 %v852_v1  ;;  %v145_v19 = vand.u32 4294901760, %v144_v15  ;;  %v858_v61 = vmov 1326507024   ;;  %p825_p5 = por %p824_p4, %p823_p3 }
  0x2e   :  { %v120_v20 = vand.u32 4294901760, %v119_v16  ;;  %v132_v21 = vsub.f32 %v130_v12, %v131_v17  ;;  %v139_v22 = vsub.f32 %v137_v13, %v138_v18  ;;  %v738_v23 = vpack.c.bf16 %v138_v18, %v131_v17 }
  0x2f   :  { %v146_v27 = vsub.f32 %v144_v15, %v145_v19  ;;  %p826_p6 = pnand %p825_p5, %p819_p2 }
  0x30   :  { %703 = vmatpush3.msra.mxu0 %v57_v9  ;;  %676 = vmatpush3.msra.mxu1 %v57_v9  ;;  %v121_v24 = vsub.f32 %v119_v16, %v120_v20  ;;  %v133_v25 = vand.u32 4294901760, %v132_v21  ;;  %v140_v26 = vand.u32 4294901760, %v139_v22 }
  0x31   :  { %705 = vmatmul.mubr.f32.vlgmr.msra.gmra.mrb[0].mxu0 %v120_v20  ;;  %728 = vmatprep.subr.bf16.mxu1 %v850_v0  ;;  %v147_v30 = vand.u32 4294901760, %v146_v27 }
  0x32   :  { %v122_v28 = vand.u32 4294901760, %v121_v24  ;;  %737 = vmatprep.subr.bf16.mxu0 %v850_v0  ;;  %v729_v29 = vpack.c.bf16 %v140_v26, %v133_v25  ;;  %713 = vmatprep.mubr.msk.f32.mxu0 %vm851_vm0, %v852_v1 }
  0x33   :  { %739 = vmatpush3.bf16.msra.mxu0 %v738_v23 }
  0x34   :  { %678 = vmatmul.mubr.f32.vlgmr.msra.gmra.mrb[0].mxu1 %v122_v28  ;;  %711 = vmatprep.subr.mxu0 %v852_v1 }
  0x35   :  { %730 = vmatpush3.bf16.msra.mxu1 %v729_v29  ;;  %686 = vmatprep.mubr.msk.f32.mxu1 %vm851_vm0, %v852_v1 }
  0x36   :  { %684 = vmatprep.subr.mxu1 %v852_v1 }
  0x37   :  { %712 = vmatpush3.msra.mxu0 %v145_v19 }
  0x38   :  { %740 = vmatprep.subr.bf16.mxu0 %v850_v0 }
  0x39   :  { %685 = vmatpush3.msra.mxu1 %v147_v30  ;;  %714 = vmatmul.mubr.f32.vlgmr.msra.gmra.mrb[0].mxu0 %v118_v14 }
  0x3a   :  { %731 = vmatprep.subr.bf16.mxu1 %v850_v0  ;;  %742 = vmatpush3.bf16.msra.mxu0 %v726_v11 }
  0x3b   :  { %720 = vmatprep.subr.mxu0 %v852_v1  ;;  %722 = vmatprep.mubr.msk.f32.mxu0 %vm851_vm0, %v852_v1 }
  0x3c   :  { %687 = vmatmul.mubr.f32.vlgmr.msra.gmra.mrb[0].mxu1 %v118_v14 }
  0x3d   :  { %733 = vmatpush3.bf16.msra.mxu1 %v732_v31  ;;  %695 = vmatprep.mubr.msk.f32.mxu1 %vm851_vm0, %v852_v1 }
  0x3e   :  { %693 = vmatprep.subr.mxu1 %v852_v1  ;;  %721 = vmatpush3.msra.mxu0 %v57_v9 }
  0x41   :  { %694 = vmatpush3.msra.mxu1 %v144_v15  ;;  %723 = vmatmul.mubr.f32.vlgmr.msra.gmra.mrb[0].mxu0 %v118_v14 }
  0x44   :  { %696 = vmatmul.mubr.f32.vlgmr.msra.gmra.mrb[0].mxu1 %v119_v16 }
 0x114   :  { %v518_v32 = vpop.f32.mrb[0].mxu0 }
 0x115   :  { %v724_v33 = vpop.f32.mrb[1].mxu0 }
 0x117   :  { %v288_v34 = vpop.f32.mrb[0].mxu1 }
 0x118   :  { %v912_v35 = vadd.f32 %v518_v32, %v288_v34  ;;  %v697_v36 = vpop.f32.mrb[1].mxu1 }
 0x11a   :  { %v525_v37 = vand.u32 2139095040, %v912_v35  ;;  %v522_v41 = vand.u32 2147483647, %v912_v35  ;;  %vm524_vm10 = vcmp.lt.s32.totalorder %v912_v35, 0  ;;  %vm614_vm15 = vweird.f32 %v912_v35 }
 0x11c   :  { %v526_v38 = vshrl.u32 %v525_v37, 23  ;;  %v529_v44 = vand.u32 8388607, %v522_v41  ;;  %vm523_vm11 = vcmp.le.f32.partialorder %v522_v41, 0.7853982 }
 0x11e   :  { %v643_v39 = vadd.s32 4294967169, %v526_v38  ;;  %v530_v63 = vor.u32 8388608, %v529_v44 }
 0x120   :  { %v532_v40 = vadd.s32 1, %v643_v39  ;;  %v570_v13 = vshll.u32 %v530_v63, 8 }
 0x122   :  { %vm533_vm3 = vcmp.gt.s32.totalorder %v532_v40, 0 }
 0x123   :  { %v534_v42 = vsel %vm533_vm3, %v532_v40, 0 }
 0x124   :  { %v536_v43 = vand.u32 31, %v534_v42  ;;  %v535_v46 = vshrl.u32 %v534_v42, 5 }
 0x126   :  { %v537_v45 = vsub.s32 32, %v536_v43  ;;  %v539_v48 = vshll.u32 %v853_v47, %v536_v43  ;;  %v542_v50 = vshll.u32 %v854_v49, %v536_v43  ;;  %v545_v54 = vshll.u32 %v855_v52, %v536_v43 }
 0x127   :  { %v548_v57 = vshll.u32 %v856_v55, %v536_v43  ;;  %v551_v60 = vshll.u32 %v857_v58, %v536_v43  ;;  %vm554_vm4 = vcmp.lt.s32.totalorder %v535_v46, 1  ;;  %vm557_vm5 = vcmp.lt.s32.totalorder %v535_v46, 4 }
 0x128   :  { %v540_v51 = vshrl.u32 %v854_v49, %v537_v45  ;;  %v543_v53 = vshrl.u32 %v855_v52, %v537_v45  ;;  %v546_v56 = vshrl.u32 %v856_v55, %v537_v45  ;;  %v549_v59 = vshrl.u32 %v857_v58, %v537_v45 }
 0x129   :  { %v552_v62 = vshrl.u32 %v858_v61, %v537_v45  ;;  %v538_v8 = vshrl.u32 %v853_v47, %v537_v45  ;;  %vm556_vm6 = vcmp.lt.s32.totalorder %v535_v46, 3  ;;  %vm555_vm7 = vcmp.lt.s32.totalorder %v535_v46, 2 }
 0x12a   :  { %v541_v0 = vor.u32 %v540_v51, %v539_v48  ;;  %v544_v1 = vor.u32 %v543_v53, %v542_v50  ;;  %v547_v2 = vor.u32 %v546_v56, %v545_v54  ;;  %v550_v3 = vor.u32 %v549_v59, %v548_v57 }
 0x12b   :  { %v553_v4 = vor.u32 %v552_v62, %v551_v60 }
 0x12c   :  { %v559_v5 = vsel %vm557_vm5, %v547_v2, 2102212464  ;;  %v562_v6 = vsel %vm554_vm4, %v541_v0, %v544_v1  ;;  %v566_v7 = vsel %vm554_vm4, %v544_v1, %v547_v2  ;;  %v563_v9 = vsel %vm557_vm5, %v550_v3, 920167782 }
 0x12d   :  { %v567_v10 = vsel %vm557_vm5, %v553_v4, 1326507024  ;;  %v564_v11 = vsel %vm556_vm6, %v547_v2, %v563_v9  ;;  %v558_v14 = vsel %vm554_vm4, %v538_v8, %v541_v0  ;;  %v560_v15 = vsel %vm556_vm6, %v544_v1, %v559_v5 }
 0x12e   :  { %v568_v12 = vsel %vm556_vm6, %v550_v3, %v567_v10  ;;  %v565_v16 = vsel %vm555_vm7, %v562_v6, %v564_v11  ;;  %v561_v22 = vsel %vm555_vm7, %v558_v14, %v560_v15 }
 0x12f   :  { %v569_v17 = vsel %vm555_vm7, %v566_v7, %v568_v12  ;;  %v921_v20 = vmul.u32.u64.low %v570_v13, %v565_v16  ;;  %v922_v21 = vmul.u32.u64.high %v570_v13, %v565_v16, %v921_v20  ;;  %v577_v24 = vmul.u32 %v570_v13, %v561_v22 }
 0x130   :  { %v918_v18 = vmul.u32.u64.low %v570_v13, %v569_v17  ;;  %v919_v19 = vmul.u32.u64.high %v570_v13, %v569_v17, %v918_v18 }
 0x131   :  { %v580_v23 = vadd.s32 1, %v922_v21 }
 0x132   :  { %vm579_vm8 = vc.u32 %v919_v19, %v921_v20  ;;  %v578_v37 = vadd.s32 %v921_v20, %v919_v19 }
 0x133   :  { %v581_v25 = vsel %vm579_vm8, %v580_v23, %v922_v21 }
 0x134   :  { %v582_v26 = vadd.s32 %v581_v25, %v577_v24 }
 0x136   :  { %v583_v27 = vadd.s32 536870912, %v582_v26 }
 0x138   :  { %v584_v28 = vshrl.u32 %v583_v27, 30 }
 0x13a   :  { %v585_v29 = vshll.u32 %v584_v28, 30  ;;  %v608_v50 = vsub.s32 4, %v584_v28 }
 0x13c   :  { %v586_v30 = vsub.s32 %v582_v26, %v585_v29  ;;  %v609_v53 = vsel %vm524_vm10, %v608_v50, %v584_v28 }
 0x13d   :  { %v611_v55 = vsel %vm523_vm11, 0, %v609_v53 }
 0x13e   :  { %v588_v31 = vsub.s32 0, %v586_v30  ;;  %v615_v56 = vadd.s32 3, %v611_v55 }
 0x140   :  { %v644_v32 = vmin.u32 %v588_v31, %v586_v30  ;;  %v616_v57 = vand.u32 3, %v615_v56 }
 0x142   :  { %v590_v33 = vclz %v644_v32  ;;  %vm621_vm12 = vcmp.eq.s32.totalorder %v616_v57, 2  ;;  %vm618_vm13 = vcmp.eq.s32.totalorder %v616_v57, 0  ;;  %vm617_vm14 = vcmp.lt.s32.totalorder %v616_v57, 2 }
 0x144   :  { %v645_v34 = vadd.s32 4294967294, %v590_v33 }
 0x146   :  { %vm646_vm9 = vcmp.lt.s32.totalorder %v645_v34, 0 }
 0x147   :  { %v593_v36 = vsel %vm646_vm9, 0, %v645_v34 }
 0x148   :  { %v594_v38 = vsub.s32 32, %v593_v36  ;;  %v598_v39 = vsub.s32 4294967266, %v593_v36  ;;  %v595_v40 = vshll.u32 %v586_v30, %v593_v36 }
 0x14a   :  { %v596_v42 = vshrl.u32 %v578_v37, %v594_v38  ;;  %v599_v43 = vadd.s32 127, %v598_v39 }
 0x14c   :  { %v597_v44 = vor.u32 %v596_v42, %v595_v40  ;;  %v600_v45 = vshll.u32 %v599_v43, 23 }
 0x14e   :  { %v601_v46 = vor.u32 4788187, %v600_v45  ;;  %v604_v48 = vcvt.s32.f32 %v597_v44 }
 0x150   :  { %v602_v47 = vand.u32 2147483647, %v601_v46 }
 0x152   :  { %v605_v49 = vmul.f32 %v604_v48, %v602_v47 }
 0x154   :  { %v606_v51 = vxor.u32 2147483648, %v605_v49 }
 0x156   :  { %v607_v52 = vsel %vm524_vm10, %v606_v51, %v605_v49 }
 0x157   :  { %v610_v54 = vsel %vm523_vm11, %v912_v35, %v607_v52 }
 0x158   :  { %770 = vcosq.f32 %v610_v54 }
 0x159   :  { %772 = vsinq.f32 %v610_v54 }
 0x162   :  { %v771_v58 = vpop.eup %770 }
 0x163   :  { %v773_v59 = vpop.eup %772  ;;  %v622_v60 = vxor.u32 2147483648, %v771_v58 }
 0x164   :  { %v619_v61 = vxor.u32 2147483648, %v773_v59 }
 0x165   :  { %v623_v62 = vsel %vm621_vm12, %v622_v60, %v773_v59 }
 0x166   :  { %v620_v63 = vsel %vm618_vm13, %v771_v58, %v619_v61 }
 0x167   :  { %v624_v41 = vsel %vm617_vm14, %v620_v63, %v623_v62 }
 0x168   :  { %v625_v0 = vsel %vm614_vm15, nan, %v624_v41 }
 0x169   :  { %626 = vst [vmem:[#allocation7] sm:$0xf] %v625_v0 }
 0x16a   :  { %829 = shalt.err (!%p826_p6)
}
 0x16b   :  { %s830_s10 = scalar_lea.hbm %s947_s2, 64 }
 0x16c   :  { %p831_p7 = scmp.ne.s32.totalorder %s947_s2, %s830_s10  ;;  %p834_p8 = scmp.lt.u32.totalorder %s830_s10, %s947_s2 }
 0x16e   :  { %p836_p9 = pnand %p834_p8, %p831_p7 }
 0x170   :  { %839 = shalt.err (!%p836_p9)
}
 0x171   :  { %636 = dma.vmem_to_hbm [thread:$0]  %s634_s6, 64, %s947_s2, [#allocation4]  }
 0x172   :  { %844 = dma.done.wait [#allocation4], 64  }
 0x173   :  { %845 = vsyncadd [#allocation4], 4294967232 }
 0x174   :  { %640 = vsyncpa [#allocation3], 1 }
 0x175   :  { %641 = vsyncpa [#allocation6], 1 }
 0x176   :  { %642 = vsyncpa [#allocation4], 1 }

</bundles_post_ra>
